<compile_context>
chip_gen: v5e
topology: v5e:2x2
jax: 0.10.0
libtpu: 0.0.40
codegen_flags: <defaults>
</compile_context>

<pallas_src>
import functools

import jax
import jax.numpy as jnp
from jax import lax
from jax.experimental import pallas as pl
from jax.experimental.pallas import tpu as pltpu


# --------------------------------------------------------------------------- #
# Kernel
# --------------------------------------------------------------------------- #
def _swiglu_kernel(x_ref, wgu_ref, wdt_ref, o_ref, acc_ref):
    # x_ref:   (tm, H)      tile of input rows
    # wgu_ref: (2, ti, H)   stacked [gate; up] weight chunk (torch layout rows)
    # wdt_ref: (ti, H)      down_proj weight, pre-transposed to (I, H)
    # o_ref:   (tm, H)      output tile
    # acc_ref: (tm, H) f32  accumulator over the I (reduction) grid axis
    k = pl.program_id(1)

    @pl.when(k == 0)
    def _():
        acc_ref[...] = jnp.zeros_like(acc_ref)

    x = x_ref[...]
    # (tm, H) x (ti, H) -> (tm, ti), contracting the shared last dims.
    contract_last = (((1,), (1,)), ((), ()))
    gate = lax.dot_general(x, wgu_ref[0], contract_last,
                           preferred_element_type=jnp.float32)
    up = lax.dot_general(x, wgu_ref[1], contract_last,
                         preferred_element_type=jnp.float32)

    # SiLU(gate) * up for this I-chunk, in f32 (VPU/EUP overlaps MXU/DMA).
    h = (gate * jax.nn.sigmoid(gate)) * up

    # Canonical (M,K)x(K,N) down projection: (tm, ti) @ (ti, H) -> (tm, H).
    acc_ref[...] += jnp.dot(h.astype(wdt_ref.dtype), wdt_ref[...],
                            preferred_element_type=jnp.float32)

    @pl.when(k == pl.num_programs(1) - 1)
    def _():
        o_ref[...] = acc_ref[...].astype(o_ref.dtype)


# --------------------------------------------------------------------------- #
# Tiling / budget helpers
# --------------------------------------------------------------------------- #
def _round_up(x, m):
    return ((x + m - 1) // m) * m


def _generation_config():
    """Per-TPU-generation tiling preferences and VMEM budget."""
    kind = ""
    try:
        kind = jax.devices()[0].device_kind.lower()
    except Exception:
        pass
    vmem_cap = None
    try:
        vmem_cap = pltpu.get_tpu_info().vmem_capacity_bytes
    except Exception:
        pass

    if "v7" in kind:
        cfg = dict(tm=512, ti=256, vmem=56 << 20, min_tm=256, split_rows=True)
    elif "v6" in kind:
        cfg = dict(tm=1024, ti=512, vmem=100 << 20, min_tm=256, split_rows=False)
    elif "v5" in kind:
        cfg = dict(tm=512, ti=512, vmem=96 << 20, min_tm=128, split_rows=False)
    else:
        # Unknown generation: conservative budget that also fits v7x's 64 MiB.
        cfg = dict(tm=512, ti=256, vmem=48 << 20, min_tm=128, split_rows=False)

    if vmem_cap is not None:
        cfg["vmem"] = min(cfg["vmem"], int(vmem_cap * 0.85))
    return cfg


def _vmem_footprint(tm, ti, H, x_bytes, w_bytes, o_bytes):
    return (2 * tm * H * x_bytes          # x tile (double buffered)
            + 2 * 2 * ti * H * w_bytes    # stacked gate/up weight block
            + 2 * ti * H * w_bytes        # transposed down-proj block
            + 2 * tm * H * o_bytes        # output tile
            + tm * H * 4                  # f32 accumulator scratch
            + 3 * tm * ti * 4)            # gate/up/h f32 intermediates


def _pick_ti(I, preferred):
    """Largest multiple of 128 <= preferred dividing I, else full I."""
    if I <= preferred:
        return I
    t = (preferred // 128) * 128
    while t >= 128:
        if I % t == 0:
            return t
        t -= 128
    return I  # no lane-aligned divisor; single full-I reduction step


def _pick_tm(M, preferred):
    """Never collapse to tiny tiles; M gets padded up to a multiple of tm."""
    if M <= preferred:
        return _round_up(M, 8)
    return preferred


# --------------------------------------------------------------------------- #
# pallas_call wrapper
# --------------------------------------------------------------------------- #
@functools.partial(jax.jit, static_argnames=("tm", "ti", "vmem_limit_bytes"))
def _swiglu_fused(x, wgu, wdt, *, tm, ti, vmem_limit_bytes):
    """x: (B,S,H); wgu: (2,I,H) stacked [gate; up]; wdt: (I,H) = down_proj.T."""
    B, S, H = x.shape
    _, I, _ = wgu.shape
    M = B * S
    assert I % ti == 0

    x2 = x.reshape(M, H)
    n_row = pl.cdiv(M, tm)
    M_pad = n_row * tm
    if M_pad != M:
        x2 = jnp.pad(x2, ((0, M_pad - M), (0, 0)))
    n_red = I // ti

    # Honest traffic estimate: weights are re-read once per row-tile pass.
    flops = 6 * M_pad * H * I
    bytes_accessed = (M_pad * H * x2.dtype.itemsize
                      + n_row * (wgu.size * wgu.dtype.itemsize
                                 + wdt.size * wdt.dtype.itemsize)
                      + M_pad * H * x.dtype.itemsize)

    out2 = pl.pallas_call(
        _swiglu_kernel,
        out_shape=jax.ShapeDtypeStruct((M_pad, H), x.dtype),
        grid_spec=pltpu.PrefetchScalarGridSpec(
            num_scalar_prefetch=0,
            grid=(n_row, n_red),
            in_specs=[
                pl.BlockSpec((tm, H), lambda i, k: (i, 0)),        # x rows
                pl.BlockSpec((2, ti, H), lambda i, k: (0, k, 0)),  # gate+up chunk
                pl.BlockSpec((ti, H), lambda i, k: (k, 0)),        # down_proj^T chunk
            ],
            out_specs=pl.BlockSpec((tm, H), lambda i, k: (i, 0)),
            scratch_shapes=[pltpu.VMEM((tm, H), jnp.float32)],
        ),
        compiler_params=pltpu.CompilerParams(
            dimension_semantics=("parallel", "arbitrary"),
            vmem_limit_bytes=vmem_limit_bytes,
        ),
        cost_estimate=pl.CostEstimate(
            flops=flops,
            transcendentals=M_pad * I,
            bytes_accessed=bytes_accessed),
    )(x2, wgu, wdt)

    if M_pad != M:
        out2 = out2[:M]
    return out2.reshape(B, S, H)


def swiglu(x, wg, wu, wd, *, tm=None, ti=None):
    """SwiGLU forward, matching torch: down_proj(silu(gate_proj(x)) * up_proj(x)).

    x      : (B, S, H)
    wg, wu : (I, H)  torch nn.Linear(hidden, intermediate, bias=False) weights
    wd     : (H, I)  torch nn.Linear(intermediate, hidden, bias=False) weight
    """
    B, S, H = x.shape
    I, H_w = wg.shape
    assert H_w == H and wu.shape == (I, H) and wd.shape == (H, I)
    M = B * S

    cfg = _generation_config()
    auto = (tm is None) and (ti is None)

    if ti is None:
        ti = _pick_ti(I, cfg["ti"])
    else:
        assert I % ti == 0, f"ti={ti} must divide I={I}"
    if tm is None:
        tm = _pick_tm(M, cfg["tm"])
    else:
        assert tm % 8 == 0 or tm >= M, f"tm={tm} must be a multiple of 8"

    if auto:
        # Shrink to fit the VMEM budget: ti first (never below 256), then tm.
        budget = cfg["vmem"] - (4 << 20)  # headroom for Mosaic internal scratch
        x_b, w_b, o_b = x.dtype.itemsize, wg.dtype.itemsize, x.dtype.itemsize
        min_ti = min(256, I)
        while _vmem_footprint(tm, ti, H, x_b, w_b, o_b) > budget:
            if ti > min_ti:
                nti = _pick_ti(I, max(min_ti, ti // 2))
                if nti < ti:
                    ti = nti
                    continue
            if tm > cfg["min_tm"]:
                tm = max(cfg["min_tm"], _round_up(tm // 2, 128))
                continue
            break
        # v7x: ensure >= 2 row tiles so the "parallel" axis feeds both cores.
        if cfg["split_rows"] and M >= 2 * cfg["min_tm"] and pl.cdiv(M, tm) < 2:
            tm = max(cfg["min_tm"], _round_up(pl.cdiv(M, 2), 128))

    # One-time weight layout change (in production do this at weight-load time,
    # outside the hot path): stack gate/up, transpose down_proj to (I, H).
    wgu = jnp.stack([wg, wu], axis=0)   # (2, I, H)
    wdt = jnp.asarray(wd.T)             # (I, H), contiguous row slabs

    return _swiglu_fused(x, wgu, wdt, tm=int(tm), ti=int(ti),
                         vmem_limit_bytes=int(cfg["vmem"]))


# --------------------------------------------------------------------------- #
# Reference + tests
# --------------------------------------------------------------------------- #
def swiglu_ref(x, wg, wu, wd):
    hp = lax.Precision.HIGHEST
    gate = jnp.einsum("bsh,ih->bsi", x, wg, precision=hp)
    up = jnp.einsum("bsh,ih->bsi", x, wu, precision=hp)
    h = jax.nn.silu(gate) * up
    return jnp.einsum("bsi,hi->bsh", h, wd, precision=hp)


if __name__ == "__main__":
    key = jax.random.PRNGKey(0)
    k_x, k_g, k_u, k_d = jax.random.split(key, 4)

    # Small shapes matching the module's forward.
    batch, seq, hidden, intermediate = 2, 8, 32, 64
    x = jax.random.normal(k_x, (batch, seq, hidden), dtype=jnp.float32)
    # torch nn.Linear(in, out, bias=False) weight shape is (out, in)
    wg = jax.random.normal(k_g, (intermediate, hidden), dtype=jnp.float32) * 0.05
    wu = jax.random.normal(k_u, (intermediate, hidden), dtype=jnp.float32) * 0.05
    wd = jax.random.normal(k_d, (hidden, intermediate), dtype=jnp.float32) * 0.05

    out = swiglu(x, wg, wu, wd)
    jax.block_until_ready(out)
    ref = swiglu_ref(x, wg, wu, wd)
    assert out.shape == (batch, seq, hidden)
    assert jnp.allclose(out, ref, atol=2e-3, rtol=2e-3)

    # Second test: awkward M (padding path), multiple row tiles + I-chunks.
    b2, s2, h2, i2 = 2, 100, 128, 512     # M = 200 -> padded to 256
    kx2, kg2, ku2, kd2 = jax.random.split(jax.random.PRNGKey(0), 4)
    x2 = jax.random.normal(kx2, (b2, s2, h2), dtype=jnp.float32)
    wg2 = jax.random.normal(kg2, (i2, h2), dtype=jnp.float32) * 0.02
    wu2 = jax.random.normal(ku2, (i2, h2), dtype=jnp.float32) * 0.02
    wd2 = jax.random.normal(kd2, (h2, i2), dtype=jnp.float32) * 0.02

    out2 = swiglu(x2, wg2, wu2, wd2, tm=128, ti=128)
    jax.block_until_ready(out2)
    ref2 = swiglu_ref(x2, wg2, wu2, wd2)
    assert jnp.allclose(out2, ref2, atol=2e-3, rtol=2e-3)

    # Third test: fully automatic (generation-dependent) tiling, bf16 weights.
    b3, s3, h3, i3 = 4, 512, 512, 1024    # M = 2048
    kx3, kg3, ku3, kd3 = jax.random.split(jax.random.PRNGKey(1), 4)
    x3 = jax.random.normal(kx3, (b3, s3, h3), dtype=jnp.bfloat16)
    wg3 = (jax.random.normal(kg3, (i3, h3)) * 0.02).astype(jnp.bfloat16)
    wu3 = (jax.random.normal(ku3, (i3, h3)) * 0.02).astype(jnp.bfloat16)
    wd3 = (jax.random.normal(kd3, (h3, i3)) * 0.02).astype(jnp.bfloat16)

    out3 = swiglu(x3, wg3, wu3, wd3)
    jax.block_until_ready(out3)
    ref3 = swiglu_ref(x3.astype(jnp.float32), wg3.astype(jnp.float32),
                      wu3.astype(jnp.float32), wd3.astype(jnp.float32))
    assert jnp.allclose(out3.astype(jnp.float32), ref3, atol=5e-2, rtol=5e-2)

    print("KERNEL_OK")
</pallas_src>

<mosaic_0001>
module attributes {stable_mosaic.version = 11 : i64} {
  func.func @_swiglu_kernel(%arg0: i32, %arg1: i32, %arg2: memref<16x32xf32, #tpu.memory_space<vmem>>, %arg3: memref<2x64x32xf32, #tpu.memory_space<vmem>>, %arg4: memref<64x32xf32, #tpu.memory_space<vmem>>, %arg5: memref<16x32xf32, #tpu.memory_space<vmem>>, %arg6: memref<16x32xf32, #tpu.memory_space<vmem>>) attributes {dimension_semantics = [#tpu.dimension_semantics<parallel>, #tpu.dimension_semantics<arbitrary>], iteration_bounds = array<i64: 1, 1>, scalar_prefetch = 0 : i64, scratch_operands = 1 : i64, tpu.core_type = #tpu.core_type<tc>, window_params = [{transform_indices = @transform_0, window_bounds = array<i64: 16, 32>}, {transform_indices = @transform_1, window_bounds = array<i64: 2, 64, 32>}, {transform_indices = @transform_2, window_bounds = array<i64: 64, 32>}, {transform_indices = @transform_3, window_bounds = array<i64: 16, 32>}]} {
    %c0_i32 = arith.constant 0 : i32
    %0 = arith.cmpi eq, %arg1, %c0_i32 : i32
    %1 = arith.extui %0 : i1 to i32
    %c0_i32_0 = arith.constant 0 : i32
    %2 = arith.cmpi ne, %1, %c0_i32_0 : i32
    scf.if %2 {
      %cst_18 = arith.constant 0.000000e+00 : f32
      %25 = vector.broadcast %cst_18 : f32 to vector<16x32xf32>
      %c0_19 = arith.constant 0 : index
      %c0_20 = arith.constant 0 : index
      %26 = vector.load %arg6[%c0_19, %c0_20] : memref<16x32xf32, #tpu.memory_space<vmem>>, vector<16x32xf32>
      tpu.vector_store %arg6[%c0_19, %c0_20], %25 {strides = array<i32>} : memref<16x32xf32, #tpu.memory_space<vmem>>, vector<16x32xf32>,
    } else {
    }
    %c0 = arith.constant 0 : index
    %c0_1 = arith.constant 0 : index
    %3 = vector.load %arg2[%c0, %c0_1] : memref<16x32xf32, #tpu.memory_space<vmem>>, vector<16x32xf32>
    %c0_2 = arith.constant 0 : index
    %c0_3 = arith.constant 0 : index
    %c0_4 = arith.constant 0 : index
    %4 = vector.load %arg3[%c0_2, %c0_3, %c0_4] : memref<2x64x32xf32, #tpu.memory_space<vmem>>, vector<1x64x32xf32>
    %5 = vector.shape_cast %4 : vector<1x64x32xf32> to vector<64x32xf32>
    %cst = arith.constant dense<0.000000e+00> : vector<16x64xf32>
    %6 = tpu.matmul %3, %5, %cst {dimension_numbers = #tpu.dot_dimension_numbers<[1], [1], [0], [0], [0, 0, 1, 0], [], []>} : vector<16x32xf32>, vector<64x32xf32>, vector<16x64xf32> -> vector<16x64xf32>
    %c1 = arith.constant 1 : index
    %c0_5 = arith.constant 0 : index
    %c0_6 = arith.constant 0 : index
    %7 = vector.load %arg3[%c1, %c0_5, %c0_6] : memref<2x64x32xf32, #tpu.memory_space<vmem>>, vector<1x64x32xf32>
    %8 = vector.shape_cast %7 : vector<1x64x32xf32> to vector<64x32xf32>
    %cst_7 = arith.constant dense<0.000000e+00> : vector<16x64xf32>
    %9 = tpu.matmul %3, %8, %cst_7 {dimension_numbers = #tpu.dot_dimension_numbers<[1], [1], [0], [0], [0, 0, 1, 0], [], []>} : vector<16x32xf32>, vector<64x32xf32>, vector<16x64xf32> -> vector<16x64xf32>
    %10 = arith.negf %6 : vector<16x64xf32>
    %11 = math.exp %10 : vector<16x64xf32>
    %cst_8 = arith.constant 1.000000e+00 : f32
    %12 = vector.broadcast %cst_8 : f32 to vector<16x64xf32>
    %13 = arith.addf %12, %11 : vector<16x64xf32>
    %14 = arith.divf %12, %13 : vector<16x64xf32>
    %15 = arith.mulf %6, %14 : vector<16x64xf32>
    %16 = arith.mulf %15, %9 : vector<16x64xf32>
    %c0_9 = arith.constant 0 : index
    %c0_10 = arith.constant 0 : index
    %17 = vector.load %arg6[%c0_9, %c0_10] : memref<16x32xf32, #tpu.memory_space<vmem>>, vector<16x32xf32>
    %c0_11 = arith.constant 0 : index
    %c0_12 = arith.constant 0 : index
    %18 = vector.load %arg4[%c0_11, %c0_12] : memref<64x32xf32, #tpu.memory_space<vmem>>, vector<64x32xf32>
    %cst_13 = arith.constant dense<0.000000e+00> : vector<16x32xf32>
    %19 = tpu.matmul %16, %18, %cst_13 {dimension_numbers = #tpu.dot_dimension_numbers<[1], [0], [0], [1], [0, 0, 1, 1], [], []>} : vector<16x64xf32>, vector<64x32xf32>, vector<16x32xf32> -> vector<16x32xf32>
    %20 = arith.addf %17, %19 : vector<16x32xf32>
    %c0_14 = arith.constant 0 : index
    %c0_15 = arith.constant 0 : index
    %21 = vector.load %arg6[%c0_14, %c0_15] : memref<16x32xf32, #tpu.memory_space<vmem>>, vector<16x32xf32>
    tpu.vector_store %arg6[%c0_14, %c0_15], %20 {strides = array<i32>} : memref<16x32xf32, #tpu.memory_space<vmem>>, vector<16x32xf32>,
    %c0_i32_16 = arith.constant 0 : i32
    %22 = arith.cmpi eq, %arg1, %c0_i32_16 : i32
    %23 = arith.extui %22 : i1 to i32
    %c0_i32_17 = arith.constant 0 : i32
    %24 = arith.cmpi ne, %23, %c0_i32_17 : i32
    scf.if %24 {
      %c0_18 = arith.constant 0 : index
      %c0_19 = arith.constant 0 : index
      %25 = vector.load %arg6[%c0_18, %c0_19] : memref<16x32xf32, #tpu.memory_space<vmem>>, vector<16x32xf32>
      %c0_20 = arith.constant 0 : index
      %c0_21 = arith.constant 0 : index
      %26 = vector.load %arg5[%c0_20, %c0_21] : memref<16x32xf32, #tpu.memory_space<vmem>>, vector<16x32xf32>
      tpu.vector_store %arg5[%c0_20, %c0_21], %25 {strides = array<i32>} : memref<16x32xf32, #tpu.memory_space<vmem>>, vector<16x32xf32>,
    } else {
    }
    return
  }
  func.func @transform_0(%arg0: i32, %arg1: i32) -> (i32, i32) {
    %c0_i32 = arith.constant 0 : i32
    %c0_i32_0 = arith.constant 0 : i32
    return %arg0, %c0_i32 : i32, i32
  }
  func.func @transform_1(%arg0: i32, %arg1: i32) -> (i32, i32, i32) {
    %c0_i32 = arith.constant 0 : i32
    %c0_i32_0 = arith.constant 0 : i32
    %c0_i32_1 = arith.constant 0 : i32
    return %c0_i32, %arg1, %c0_i32_0 : i32, i32, i32
  }
  func.func @transform_2(%arg0: i32, %arg1: i32) -> (i32, i32) {
    %c0_i32 = arith.constant 0 : i32
    %c0_i32_0 = arith.constant 0 : i32
    return %arg1, %c0_i32 : i32, i32
  }
  func.func @transform_3(%arg0: i32, %arg1: i32) -> (i32, i32) {
    %c0_i32 = arith.constant 0 : i32
    %c0_i32_0 = arith.constant 0 : i32
    return %arg0, %c0_i32 : i32, i32
  }
}

</mosaic_0001>

<bundles_post_ra>
// kernel: _swiglu_fused.1
= control target key start
LH: loop header
LB: loop body
LE: loop exit
PB: predicated region body
PF: predicated region fallthrough
CT: control target
= control target key end

     0   :  { %vm19_vm0 = vcmask 261120   ;;  %s470_s0 = inlined_call_operand.vmem [shape: f32[16,32], index: 0, kind: input, shape index: {}]   ;;  %s471_s1 = inlined_call_operand.vmem [shape: f32[2,64,32], index: 1, kind: input, shape index: {}]   ;;  %s472_s2 = inlined_call_operand.vmem [shape: f32[64,32], index: 2, kind: input, shape index: {}]   ;;  %s473_s3 = inlined_call_operand.hbm [shape: f32[16,32], index: 3, kind: output, shape index: {}]  }
   0x1   :  { %v31_v0 = vld [vmem:[%s471_s1 + $0x38] sm:$0xff]  ;;  %v30_v1 = vld [vmem:[%s471_s1 + $0x30] sm:$0xff]  ;;  %v29_v4 = vld [vmem:[%s471_s1 + $0x28] sm:$0xff] }
   0x2   :  { %253 = vmatpush.xpose.msk.msra.mxu0 %vm19_vm0, %v31_v0  ;;  %285 = vmatpush.xpose.msk.msra.mxu3 %vm19_vm0, %v31_v0  ;;  %v270_v2 = vld [vmem:[%s471_s1 + $0x78] sm:$0xff]  ;;  %v269_v3 = vld [vmem:[%s471_s1 + $0x70] sm:$0xff] }
   0x3   :  { %271 = vmatpush.xpose.msk.msra.mxu1 %vm19_vm0, %v270_v2 }
   0x6   :  { %254 = vmatpush.xpose.msk.msra.mxu0 %vm19_vm0, %v30_v1  ;;  %286 = vmatpush.xpose.msk.msra.mxu3 %vm19_vm0, %v30_v1 }
   0x7   :  { %8 = vsyncpa [#allocation4], 0  ;;  %272 = vmatpush.xpose.msk.msra.mxu1 %vm19_vm0, %v269_v3  ;;  %v268_v5 = vld [vmem:[%s471_s1 + $0x68] sm:$0xff]  ;;  %v28_v6 = vld [vmem:[%s471_s1 + $0x20] sm:$0xff]  ;;  %v331_v32 = vmov 0.0   ;;  %vm194_vm6 = vcmask 523264  }
   0x8   :  { %v267_v7 = vld [vmem:[%s471_s1 + $0x60] sm:$0xff]  ;;  %v27_v8 = vld [vmem:[%s471_s1 + $0x18] sm:$0xff]  ;;  %v26_v10 = vld [vmem:[%s471_s1 + $0x10] sm:$0xff]  ;;  %20 = vst.msk [vmem:[#allocation2] sm:$0xff] %vm19_vm0, %v331_v32  ;;  %s241_s11 = sshll.u32 %s473_s3, 4  ;;  %s333_s12 = smov 128   ;;  %s242_s11 = int_to_ptr.hbm [resolvable:$true] %s241_s11 }
   0x9   :  { %v266_v9 = vld [vmem:[%s471_s1 + $0x58] sm:$0xff]  ;;  %v265_v11 = vld [vmem:[%s471_s1 + $0x50] sm:$0xff]  ;;  %v25_v12 = vld [vmem:[%s471_s1 + $0x8] sm:$0xff]  ;;  %21 = vst.msk [vmem:[#allocation2 + $0x8] sm:$0xff] %vm19_vm0, %v331_v32  ;;  %s334_s13 = smov 8  }
   0xa   :  { %255 = vmatpush.xpose.msk.msra.mxu0 %vm19_vm0, %v29_v4  ;;  %287 = vmatpush.xpose.msk.msra.mxu3 %vm19_vm0, %v29_v4  ;;  %v264_v13 = vld [vmem:[%s471_s1 + $0x48] sm:$0xff]  ;;  %v24_v14 = vld [vmem:[%s471_s1] sm:$0xff]  ;;  %v193_v18 = vld [vmem:[%s472_s2 + $0x38] sm:$0xff] }
   0xb   :  { %273 = vmatpush.xpose.msk.msra.mxu1 %vm19_vm0, %v268_v5  ;;  %v263_v15 = vld [vmem:[%s471_s1 + $0x40] sm:$0xff]  ;;  %v23_v17 = vld [vmem:[%s470_s0 + $0x8] sm:$0xff]  ;;  %209 = vmatpush.msra.mxu2 %v193_v18  ;;  %v192_v19 = vld [vmem:[%s472_s2 + $0x30] sm:$0xff] }
   0xc   :  { %v22_v16 = vld [vmem:[%s470_s0] sm:$0xff]  ;;  %v191_v20 = vld [vmem:[%s472_s2 + $0x28] sm:$0xff]  ;;  %v189_v22 = vld [vmem:[%s472_s2 + $0x18] sm:$0xff] }
   0xd   :  { %210 = vmatpush.msra.mxu2 %v192_v19  ;;  %v190_v21 = vld [vmem:[%s472_s2 + $0x20] sm:$0xff]  ;;  %v188_v23 = vld [vmem:[%s472_s2 + $0x10] sm:$0xff]  ;;  %v187_v24 = vld [vmem:[%s472_s2 + $0x8] sm:$0xff] }
   0xe   :  { %256 = vmatpush.xpose.msk.msra.mxu0 %vm19_vm0, %v28_v6  ;;  %288 = vmatpush.xpose.msk.msra.mxu3 %vm19_vm0, %v28_v6  ;;  %v186_v25 = vld [vmem:[%s472_s2] sm:$0xff]  ;;  %s332_s2 = smov [#allocation3]  }
   0xf   :  { %274 = vmatpush.xpose.msk.msra.mxu1 %vm19_vm0, %v267_v7  ;;  %211 = vmatpush.msra.mxu2 %v191_v20  ;;  %v184_v61 = vld [vmem:[#allocation2] sm:$0xff]  ;;  %s239_s8 = sshll.u32 %s332_s2, 4  ;;  %s240_s8 = int_to_ptr.vmem [resolvable:$true] %s239_s8 }
  0x10   :  { %v185_v0 = vld [vmem:[#allocation2 + $0x8] sm:$0xff] }
  0x11   :  { %212 = vmatpush.msra.mxu2 %v190_v21 }
  0x12   :  { %257 = vmatpush.xpose.msk.msra.mxu0 %vm19_vm0, %v27_v8  ;;  %289 = vmatpush.xpose.msk.msra.mxu3 %vm19_vm0, %v27_v8 }
  0x13   :  { %275 = vmatpush.xpose.msk.msra.mxu1 %vm19_vm0, %v266_v9  ;;  %213 = vmatpush.msra.mxu2 %v189_v22 }
  0x15   :  { %214 = vmatpush.msra.mxu2 %v188_v23 }
  0x16   :  { %258 = vmatpush.xpose.msk.msra.mxu0 %vm19_vm0, %v26_v10  ;;  %290 = vmatpush.xpose.msk.msra.mxu3 %vm19_vm0, %v26_v10 }
  0x17   :  { %276 = vmatpush.xpose.msk.msra.mxu1 %vm19_vm0, %v265_v11  ;;  %215 = vmatpush.msra.mxu2 %v187_v24 }
  0x19   :  { %216 = vmatpush.msra.mxu2 %v186_v25 }
  0x1a   :  { %259 = vmatpush.xpose.msk.msra.mxu0 %vm19_vm0, %v25_v12  ;;  %291 = vmatpush.xpose.msk.msra.mxu3 %vm19_vm0, %v25_v12 }
  0x1b   :  { %277 = vmatpush.xpose.msk.msra.mxu1 %vm19_vm0, %v264_v13 }
  0x1e   :  { %260 = vmatpush.xpose.msk.msra.mxu0 %vm19_vm0, %v24_v14  ;;  %292 = vmatpush.xpose.msk.msra.mxu3 %vm19_vm0, %v24_v14 }
  0x1f   :  { %278 = vmatpush.xpose.msk.msra.mxu1 %vm19_vm0, %v263_v15 }
  0x21   :  { %261 = vmatmul.msk.f32.vlgmr.msra.gmra.mxu0 %vm19_vm0, %v22_v16  ;;  %262 = vmatmul.msk.f32.vlgmr.msra.gmra.mxu3 %vm19_vm0, %v23_v17 }
  0x22   :  { %279 = vmatmul.msk.f32.vlgmr.msra.gmra.mxu1 %vm19_vm0, %v22_v16 }
  0x2a   :  { %280 = vmatmul.msk.f32.gmra.mxu1 %vm19_vm0, %v23_v17 }
  0x9e   :  { %v80_v26 = vpop.f32.mrf.mxu0 }
  0x9f   :  { %v281_v27 = vmul.f32 -1.442695, %v80_v26  ;;  %v136_v45 = vpop.f32.mrf.mxu1 }
  0xa1   :  { %297 = vpow2.f32 %v281_v27 }
  0xa4   :  { %v83_v28 = vpop.f32.mrf.mxu3 }
  0xa5   :  { %v282_v29 = vmul.f32 -1.442695, %v83_v28 }
  0xa7   :  { %v298_v30 = vpop.eup %297  ;;  %299 = vpow2.f32 %v282_v29  ;;  %v139_v59 = vpop.f32.mrf.mxu1 }
  0xa8   :  { %v148_v31 = vadd.f32 1.0, %v298_v30 }
  0xaa   :  { %301 = vrcp.f32 %v148_v31  ;;  %v161_v38 = vand.u32 2147483648, %v148_v31  ;;  %v159_v40 = vand.u32 2147483647, %v148_v31  ;;  %vm155_vm2 = vweird.f32 %v148_v31 }
  0xac   :  { %v162_v44 = vor.u32 1.1754944e-38, %v161_v38  ;;  %vm160_vm4 = vcmp.eq.f32.partialorder %v159_v40, 8.507059e+37 }
  0xad   :  { %v300_v33 = vpop.eup %299 }
  0xae   :  { %v149_v34 = vadd.f32 1.0, %v300_v33 }
  0xb0   :  { %v302_v35 = vpop.eup %301  ;;  %303 = vrcp.f32 %v149_v34  ;;  %v176_v49 = vand.u32 2147483648, %v149_v34  ;;  %v174_v52 = vand.u32 2147483647, %v149_v34  ;;  %vm170_vm7 = vweird.f32 %v149_v34 }
  0xb1   :  { %v151_v36 = vmul.f32 %v302_v35, %v148_v31  ;;  %vm156_vm1 = vweird.f32 %v302_v35 }
  0xb2   :  { %vm157_vm3 = vmor %vm155_vm2, %vm156_vm1  ;;  %v177_v55 = vor.u32 1.1754944e-38, %v176_v49  ;;  %vm175_vm9 = vcmp.eq.f32.partialorder %v174_v52, 8.507059e+37 }
  0xb3   :  { %v152_v37 = vsub.f32 1.0, %v151_v36 }
  0xb5   :  { %v153_v39 = vmul.f32 %v302_v35, %v152_v37 }
  0xb6   :  { %v304_v41 = vpop.eup %303 }
  0xb7   :  { %v154_v42 = vadd.f32 %v302_v35, %v153_v39  ;;  %v166_v43 = vmul.f32 %v304_v41, %v149_v34  ;;  %vm171_vm5 = vweird.f32 %v304_v41 }
  0xb8   :  { %vm172_vm8 = vmor %vm170_vm7, %vm171_vm5 }
  0xb9   :  { %v158_v46 = vsel %vm157_vm3, %v302_v35, %v154_v42  ;;  %v167_v47 = vsub.f32 1.0, %v166_v43 }
  0xba   :  { %v163_v48 = vsel %vm160_vm4, %v162_v44, %v158_v46 }
  0xbb   :  { %v180_v50 = vmul.f32 %v163_v48, %v80_v26  ;;  %v168_v51 = vmul.f32 %v304_v41, %v167_v47 }
  0xbd   :  { %v169_v53 = vadd.f32 %v304_v41, %v168_v51  ;;  %v182_v54 = vmul.f32 %v180_v50, %v136_v45 }
  0xbf   :  { %v173_v56 = vsel %vm172_vm8, %v304_v41, %v169_v53  ;;  %283 = vmatmul.msk.f32.vlgmr.msra.gmra.mxu2 %vm194_vm6, %v182_v54 }
  0xc0   :  { %v178_v57 = vsel %vm175_vm9, %v177_v55, %v173_v56 }
  0xc1   :  { %v181_v58 = vmul.f32 %v178_v57, %v83_v28 }
  0xc3   :  { %v183_v60 = vmul.f32 %v181_v58, %v139_v59 }
  0xc7   :  { %284 = vmatmul.msk.f32.gmra.mxu2 %vm194_vm6, %v183_v60 }
 0x142   :  { %v218_v62 = vpop.f32.mrf.mxu2 }
 0x143   :  { %v224_v63 = vadd.f32 %v218_v62, %v184_v61 }
 0x145   :  { %226 = vst.msk [vmem:[#allocation2] sm:$0xff] %vm19_vm0, %v224_v63 }
 0x14a   :  { %v221_v1 = vpop.f32.mrf.mxu2 }
 0x14b   :  { %v225_v2 = vadd.f32 %v221_v1, %v185_v0 }
 0x14c   :  { %v231_v3 = vld [vmem:[#allocation2] sm:$0xff] }
 0x14d   :  { %227 = vst.msk [vmem:[#allocation2 + $0x8] sm:$0xff] %vm19_vm0, %v225_v2 }
 0x14e   :  { %233 = vst.msk [vmem:[#allocation3] sm:$0xff] %vm19_vm0, %v231_v3 }
 0x154   :  { %v232_v4 = vld [vmem:[#allocation2 + $0x8] sm:$0xff] }
 0x155   :  { %234 = vst.msk [vmem:[#allocation3 + $0x8] sm:$0xff] %vm19_vm0, %v232_v4 }
 0x156   :  { %247 = dma.vmem_to_hbm [thread:$0]  %s240_s8, 256, %s242_s11, [#allocation4], %s333_s12, %s333_s12, %s334_s13  }
 0x157   :  { %329 = dma.done.wait [#allocation4], 256  }
 0x158   :  { %330 = vsyncadd [#allocation4], 4294967040 }
 0x159   :  { %252 = vsyncpa [#allocation4], 1 }

</bundles_post_ra>
